<compile_context>
chip_gen: v6e
topology: v6e:2x2x1
jax: 0.10.0
libtpu: 0.0.40
codegen_flags: <defaults>
</compile_context>

<pallas_src>
import numpy as np
import jax
import jax.numpy as jnp
from jax.experimental import pallas as pl
from jax.experimental.pallas import tpu as pltpu


# ---------------------------------------------------------------------------
# Parameter setup (matches RoPEPosionEmbedding._init_weight exactly)
# ---------------------------------------------------------------------------
def _sinusoidal_table(n_pos: int, dim: int) -> np.ndarray:
    """(n_pos, dim): [:, :dim//2] = sin(even cols), [:, dim//2:] = cos(odd cols)."""
    assert dim % 2 == 0
    pos = np.arange(n_pos, dtype=np.float64)[:, None]
    j = np.arange(dim, dtype=np.int64)[None, :]
    enc = pos / np.power(10000.0, 2 * (j // 2) / dim)
    sentinel = dim // 2
    out = np.zeros((n_pos, dim), dtype=np.float32)
    out[:, :sentinel] = np.sin(enc[:, 0::2]).astype(np.float32)
    out[:, sentinel:] = np.cos(enc[:, 1::2]).astype(np.float32)
    return out


# ---------------------------------------------------------------------------
# Pallas kernels
# ---------------------------------------------------------------------------
def _rope2d_kernel(p1_ref, p2_ref, cos_ref, sin_ref, x_ref, o_ref):
    # x_ref/o_ref: (blk_rows, L) lane-dense slabs.
    # p1/p2: (L, L) block-diagonal 0/1 permutation matrices -> the even/odd
    # de-interleave and partner-swap run on the otherwise idle MXU.
    xf = x_ref[...].astype(jnp.float32)
    a = jnp.dot(xf, p1_ref[...], preferred_element_type=jnp.float32)
    b = jnp.dot(xf, p2_ref[...], preferred_element_type=jnp.float32)
    o_ref[...] = (a * cos_ref[...] + b * sin_ref[...]).astype(o_ref.dtype)


def _rope2d_kernel_cls(p1_ref, p2_ref, cos_ref, sin_ref, gate_ref, x_ref, o_ref):
    # Same as above plus identity pass-through for cls-token rows
    # (gate == 1, cos == sin == 0 there) -> no wrapper-side concatenate needed.
    xf = x_ref[...].astype(jnp.float32)
    a = jnp.dot(xf, p1_ref[...], preferred_element_type=jnp.float32)
    b = jnp.dot(xf, p2_ref[...], preferred_element_type=jnp.float32)
    o_ref[...] = (xf * gate_ref[...] + a * cos_ref[...]
                  + b * sin_ref[...]).astype(o_ref.dtype)


def _choose_block_heads(num_heads, rows_per_head, row_bytes, block_budget_bytes):
    """Largest head-count per block that fits the budget, keeps the block's
    second-minor dim a multiple of 8 (unless block == full array) and leaves
    >= 2 grid steps when possible (megacore sharding)."""
    divs = [t for t in range(1, num_heads + 1) if num_heads % t == 0]

    def aligned(t):
        return (t * rows_per_head) % 8 == 0 or t == num_heads

    def fits(t):
        return t * rows_per_head * row_bytes <= block_budget_bytes

    cands = [t for t in divs if aligned(t) and fits(t)]
    multi = [t for t in cands if num_heads // t >= 2]
    if multi:
        return max(multi)
    if cands:
        return max(cands)
    aligned_divs = [t for t in divs if aligned(t)]
    return min(aligned_divs) if aligned_divs else num_heads


# ---------------------------------------------------------------------------
# Module wrapper
# ---------------------------------------------------------------------------
class RoPE2DPallas:
    def __init__(self, window_size, embedding_dim):
        assert embedding_dim % 4 == 0
        Wh, Ww = window_size
        self.window_size = (Wh, Ww)
        self.head_dim = embedding_dim
        half = embedding_dim // 2              # per-axis embedding dim
        q = half // 2                          # = embedding_dim // 4

        tab_x = _sinusoidal_table(Wh, half)    # rope_x.weight
        tab_y = _sinusoidal_table(Ww, half)    # rope_y.weight

        # 2-D index: torch.meshgrid (indexing='ij'), flattened.
        pos_x = np.repeat(np.arange(Wh), Ww)
        pos_y = np.tile(np.arange(Ww), Wh)
        ex = tab_x[pos_x]                      # (S, half)
        ey = tab_y[pos_y]
        sin_x, cos_x = ex[:, :q], ex[:, q:]    # chunk(2, dim=-1)
        sin_y, cos_y = ey[:, :q], ey[:, q:]

        # Kept for the pure-JAX reference.
        self.sin_x = jnp.asarray(sin_x)
        self.cos_x = jnp.asarray(cos_x)
        self.sin_y = jnp.asarray(sin_y)
        self.cos_y = jnp.asarray(cos_y)

        # Per-token (D,) tables in the final 'qk' output ordering:
        #   out[j] = x[pi1[j]] * cos_tok[j] + x[pi2[j]] * sin_tok[j]
        self._cos_tok = np.concatenate(
            [cos_x, cos_x, cos_y, cos_y], axis=-1).astype(np.float32)      # (S, D)
        self._sin_tok = np.concatenate(
            [-sin_x, sin_x, -sin_y, sin_y], axis=-1).astype(np.float32)    # (S, D)

        # Lane permutations within one token (output lane j reads input lane pi[j]).
        idx = np.arange(q)
        self._pi1 = np.concatenate(
            [2 * idx, 2 * idx + 1, half + 2 * idx, half + 2 * idx + 1])    # A operand
        self._pi2 = np.concatenate(
            [2 * idx + 1, 2 * idx, half + 2 * idx + 1, half + 2 * idx])    # B operand

        self._cache = {}

    # -- constant operands (perm matrices + tables), cached per configuration --
    def _operands(self, S_total, cls_token, L, TB):
        key = (S_total, cls_token, L, TB)
        if key in self._cache:
            return self._cache[key]
        D = self.head_dim
        reps = L // D

        def perm_mat(pi):
            pd = np.zeros((D, D), np.float32)
            pd[pi, np.arange(D)] = 1.0                 # (x @ P)[j] = x[pi[j]]
            return np.kron(np.eye(reps, dtype=np.float32), pd)

        p1 = jnp.asarray(perm_mat(self._pi1))
        p2 = jnp.asarray(perm_mat(self._pi2))

        cos_flat = np.zeros((S_total, D), np.float32)
        sin_flat = np.zeros((S_total, D), np.float32)
        gate_flat = np.zeros((S_total, D), np.float32)
        gate_flat[:cls_token, :] = 1.0                 # identity rows (cls tokens)
        cos_flat[cls_token:, :] = self._cos_tok
        sin_flat[cls_token:, :] = self._sin_tok

        rows = (S_total * D) // L
        cos_t = jnp.asarray(np.tile(cos_flat.reshape(rows, L), (TB, 1)))
        sin_t = jnp.asarray(np.tile(sin_flat.reshape(rows, L), (TB, 1)))
        gate_t = (jnp.asarray(np.tile(gate_flat.reshape(rows, L), (TB, 1)))
                  if cls_token > 0 else None)
        self._cache[key] = (p1, p2, cos_t, sin_t, gate_t)
        return self._cache[key]

    def __call__(self, x, cls_token=0, add="qk"):
        assert add == "qk"  # TODO(synk): add=='v' and mask_index not implemented
        B, H, S_total, D = x.shape
        Wh, Ww = self.window_size
        assert S_total - cls_token == Wh * Ww
        assert D == self.head_dim
        BH = B * H

        # Lane-dense layout selection.
        if D % 128 == 0:
            L = D
        elif (128 % D == 0) and ((S_total * D) % 128 == 0):
            L = 128
        else:
            L = D  # TODO(synk): sub-128 lane width -> masked stores for this shape
        rows_per_head = (S_total * D) // L
        row_bytes = L * x.dtype.itemsize

        # ~1 MiB x-blocks: >=85% of HBM roofline per-step while keeping total
        # VMEM (x, out, tables, all double-buffered) comfortably bounded.
        TB = _choose_block_heads(BH, rows_per_head, row_bytes,
                                 block_budget_bytes=1 * 1024 * 1024)
        grid = BH // TB
        blk_rows = TB * rows_per_head
        blk_bytes_x = blk_rows * row_bytes
        tab_bytes = blk_rows * L * 4
        n_tabs = 3 if cls_token > 0 else 2
        need = (2 * 2 * blk_bytes_x            # x + out, double-buffered
                + 2 * n_tabs * tab_bytes       # cos/sin(/gate), double-buffered
                + 2 * 2 * L * L * 4)           # perm matrices
        vmem_limit = int(min(64 << 20, max(32 << 20, int(need * 1.5))))

        p1, p2, cos_t, sin_t, gate_t = self._operands(S_total, cls_token, L, TB)

        # Pure reshape: contiguous, no data movement through HBM.
        xf = x.reshape(BH * rows_per_head, L)

        perm_spec = pl.BlockSpec((L, L), lambda i: (0, 0))
        tab_spec = pl.BlockSpec((blk_rows, L), lambda i: (0, 0))
        x_spec = pl.BlockSpec((blk_rows, L), lambda i: (i, 0))

        if cls_token > 0:
            kernel = _rope2d_kernel_cls
            operands = (p1, p2, cos_t, sin_t, gate_t, xf)
            in_specs = [perm_spec, perm_spec, tab_spec, tab_spec, tab_spec, x_spec]
        else:
            kernel = _rope2d_kernel
            operands = (p1, p2, cos_t, sin_t, xf)
            in_specs = [perm_spec, perm_spec, tab_spec, tab_spec, x_spec]

        out = pl.pallas_call(
            kernel,
            out_shape=jax.ShapeDtypeStruct((BH * rows_per_head, L), x.dtype),
            grid_spec=pltpu.PrefetchScalarGridSpec(
                num_scalar_prefetch=0,
                grid=(grid,),
                in_specs=in_specs,
                out_specs=pl.BlockSpec((blk_rows, L), lambda i: (i, 0)),
            ),
            compiler_params=pltpu.CompilerParams(
                dimension_semantics=("parallel",),
                vmem_limit_bytes=vmem_limit,
            ),
        )(*operands)

        return out.reshape(B, H, S_total, D)


# ---------------------------------------------------------------------------
# Pure-JAX reference (mirrors the PyTorch forward, add='qk')
# ---------------------------------------------------------------------------
def rope2d_ref(x, sin_x, cos_x, sin_y, cos_y, cls_token=0):
    half = x.shape[-1] // 2
    xn = x[:, :, cls_token:, :]
    x_x, x_y = xn[..., :half], xn[..., half:]
    x1x, x2x = x_x[..., 0::2], x_x[..., 1::2]
    x1y, x2y = x_y[..., 0::2], x_y[..., 1::2]
    sx, cx = sin_x[None, None], cos_x[None, None]
    sy, cy = sin_y[None, None], cos_y[None, None]
    out = jnp.concatenate(
        [x1x * cx - x2x * sx, x2x * cx + x1x * sx,
         x1y * cy - x2y * sy, x2y * cy + x1y * sy], axis=-1)
    if cls_token > 0:
        out = jnp.concatenate([x[:, :, :cls_token, :], out], axis=2)
    return out


if __name__ == "__main__":
    Wh, Ww = 8, 8           # window_size
    D = 32                  # head_dim (embedding_dim), % 4 == 0
    B, H = 2, 4             # batch, heads
    S = Wh * Ww             # 64 window tokens

    rope = RoPE2DPallas((Wh, Ww), D)
    k0, k1 = jax.random.split(jax.random.PRNGKey(0))

    # Tolerance note: the in-kernel permutation runs on the MXU; its f32 matmul
    # may use a multi-pass decomposition, so allow a small numeric headroom
    # (structural/layout bugs would produce O(1) errors and still be caught).
    ATOL = RTOL = 5e-4

    # Main path: no cls token, lane-dense 128-wide layout, multiple grid steps.
    x = jax.random.normal(k0, (B, H, S, D), dtype=jnp.float32)
    out = jax.block_until_ready(rope(x, cls_token=0, add="qk"))
    ref = rope2d_ref(x, rope.sin_x, rope.cos_x, rope.sin_y, rope.cos_y, cls_token=0)
    assert out.shape == ref.shape == (B, H, S, D)
    np.testing.assert_allclose(np.asarray(out), np.asarray(ref), atol=ATOL, rtol=RTOL)

    # cls-token path: rotation + identity pass-through fused in one kernel call.
    x2 = jax.random.normal(k1, (B, H, S + 1, D), dtype=jnp.float32)
    out2 = jax.block_until_ready(rope(x2, cls_token=1, add="qk"))
    ref2 = rope2d_ref(x2, rope.sin_x, rope.cos_x, rope.sin_y, rope.cos_y, cls_token=1)
    assert out2.shape == ref2.shape == (B, H, S + 1, D)
    np.testing.assert_allclose(np.asarray(out2), np.asarray(ref2), atol=ATOL, rtol=RTOL)

    print("KERNEL_OK")
</pallas_src>

<mosaic_0001>
module attributes {stable_mosaic.version = 11 : i64} {
  func.func @_rope2d_kernel(%arg0: i32, %arg1: memref<128x128xf32, #tpu.memory_space<vmem>>, %arg2: memref<128x128xf32, #tpu.memory_space<vmem>>, %arg3: memref<64x128xf32, #tpu.memory_space<vmem>>, %arg4: memref<64x128xf32, #tpu.memory_space<vmem>>, %arg5: memref<64x128xf32, #tpu.memory_space<vmem>>, %arg6: memref<64x128xf32, #tpu.memory_space<vmem>>) attributes {dimension_semantics = [#tpu.dimension_semantics<parallel>], iteration_bounds = array<i64: 2>, scalar_prefetch = 0 : i64, scratch_operands = 0 : i64, tpu.core_type = #tpu.core_type<tc>, window_params = [{pipeline_mode = #tpu.pipeline_mode<synchronous>, transform_indices = @transform_0, window_bounds = array<i64: 128, 128>}, {pipeline_mode = #tpu.pipeline_mode<synchronous>, transform_indices = @transform_1, window_bounds = array<i64: 128, 128>}, {pipeline_mode = #tpu.pipeline_mode<synchronous>, transform_indices = @transform_2, window_bounds = array<i64: 64, 128>}, {pipeline_mode = #tpu.pipeline_mode<synchronous>, transform_indices = @transform_3, window_bounds = array<i64: 64, 128>}, {transform_indices = @transform_4, window_bounds = array<i64: 64, 128>}, {transform_indices = @transform_5, window_bounds = array<i64: 64, 128>}]} {
    %c0 = arith.constant 0 : index
    %c0_0 = arith.constant 0 : index
    %0 = vector.load %arg5[%c0, %c0_0] : memref<64x128xf32, #tpu.memory_space<vmem>>, vector<64x128xf32>
    %c0_1 = arith.constant 0 : index
    %c0_2 = arith.constant 0 : index
    %1 = vector.load %arg1[%c0_1, %c0_2] : memref<128x128xf32, #tpu.memory_space<vmem>>, vector<128x128xf32>
    %cst = arith.constant dense<0.000000e+00> : vector<64x128xf32>
    %2 = tpu.matmul %0, %1, %cst {dimension_numbers = #tpu.dot_dimension_numbers<[1], [0], [0], [1], [0, 0, 1, 1], [], []>} : vector<64x128xf32>, vector<128x128xf32>, vector<64x128xf32> -> vector<64x128xf32>
    %c0_3 = arith.constant 0 : index
    %c0_4 = arith.constant 0 : index
    %3 = vector.load %arg2[%c0_3, %c0_4] : memref<128x128xf32, #tpu.memory_space<vmem>>, vector<128x128xf32>
    %cst_5 = arith.constant dense<0.000000e+00> : vector<64x128xf32>
    %4 = tpu.matmul %0, %3, %cst_5 {dimension_numbers = #tpu.dot_dimension_numbers<[1], [0], [0], [1], [0, 0, 1, 1], [], []>} : vector<64x128xf32>, vector<128x128xf32>, vector<64x128xf32> -> vector<64x128xf32>
    %c0_6 = arith.constant 0 : index
    %c0_7 = arith.constant 0 : index
    %5 = vector.load %arg3[%c0_6, %c0_7] : memref<64x128xf32, #tpu.memory_space<vmem>>, vector<64x128xf32>
    %6 = arith.mulf %2, %5 : vector<64x128xf32>
    %c0_8 = arith.constant 0 : index
    %c0_9 = arith.constant 0 : index
    %7 = vector.load %arg4[%c0_8, %c0_9] : memref<64x128xf32, #tpu.memory_space<vmem>>, vector<64x128xf32>
    %8 = arith.mulf %4, %7 : vector<64x128xf32>
    %9 = arith.addf %6, %8 : vector<64x128xf32>
    %c0_10 = arith.constant 0 : index
    %c0_11 = arith.constant 0 : index
    %10 = vector.load %arg6[%c0_10, %c0_11] : memref<64x128xf32, #tpu.memory_space<vmem>>, vector<64x128xf32>
    tpu.vector_store %arg6[%c0_10, %c0_11], %9 {strides = array<i32>} : memref<64x128xf32, #tpu.memory_space<vmem>>, vector<64x128xf32>,
    return
  }
  func.func @transform_0(%arg0: i32) -> (i32, i32) {
    %c0_i32 = arith.constant 0 : i32
    %c0_i32_0 = arith.constant 0 : i32
    %c0_i32_1 = arith.constant 0 : i32
    return %c0_i32, %c0_i32_0 : i32, i32
  }
  func.func @transform_1(%arg0: i32) -> (i32, i32) {
    %c0_i32 = arith.constant 0 : i32
    %c0_i32_0 = arith.constant 0 : i32
    %c0_i32_1 = arith.constant 0 : i32
    return %c0_i32, %c0_i32_0 : i32, i32
  }
  func.func @transform_2(%arg0: i32) -> (i32, i32) {
    %c0_i32 = arith.constant 0 : i32
    %c0_i32_0 = arith.constant 0 : i32
    %c0_i32_1 = arith.constant 0 : i32
    return %c0_i32, %c0_i32_0 : i32, i32
  }
  func.func @transform_3(%arg0: i32) -> (i32, i32) {
    %c0_i32 = arith.constant 0 : i32
    %c0_i32_0 = arith.constant 0 : i32
    %c0_i32_1 = arith.constant 0 : i32
    return %c0_i32, %c0_i32_0 : i32, i32
  }
  func.func @transform_4(%arg0: i32) -> (i32, i32) {
    %c0_i32 = arith.constant 0 : i32
    %c0_i32_0 = arith.constant 0 : i32
    return %arg0, %c0_i32 : i32, i32
  }
  func.func @transform_5(%arg0: i32) -> (i32, i32) {
    %c0_i32 = arith.constant 0 : i32
    %c0_i32_0 = arith.constant 0 : i32
    return %arg0, %c0_i32 : i32, i32
  }
}

</mosaic_0001>

<bundles_post_ra>
// kernel: tpu_custom_call.1
= control target key start
LH: loop header
LB: loop body
LE: loop exit
PB: predicated region body
PF: predicated region fallthrough
CT: control target
= control target key end

     0   :  { %10 = vsyncpa [#allocation3], 0  ;;  %s1479_s0 = inlined_call_operand.hbm [shape: f32[128,128], index: 0, kind: input, shape index: {}]   ;;  %s1480_s1 = inlined_call_operand.hbm [shape: f32[128,128], index: 1, kind: input, shape index: {}]   ;;  %s1481_s2 = inlined_call_operand.hbm [shape: f32[64,128], index: 2, kind: input, shape index: {}]   ;;  %s1482_s3 = inlined_call_operand.hbm [shape: f32[64,128], index: 3, kind: input, shape index: {}]   ;;  %s1483_s4 = inlined_call_operand.hbm [shape: f32[128,128], index: 4, kind: input, shape index: {}]   ;;  %s1484_s5 = inlined_call_operand.hbm [shape: f32[128,128], index: 5, kind: output, shape index: {}]  }
   0x1   :  { %11 = vsyncpa [#allocation6], 0 }
   0x2   :  { %12 = vsyncpa [#allocation9], 0 }
   0x3   :  { %13 = vsyncpa [#allocation4], 0 }
   0x4   :  { %15 = vsyncpa [#allocation4 + $0x1], 0  ;;  %s1225_s18 = smov 0   ;;  %s1227_s19 = smov 0  }
   0x5   :  { %s1229_s20 = smov 0   ;;  %s1231_s21 = smov 0  }
   0x6 LB: > { %s1246_s22 = sadd.s32 4294967295, %s1183_s21   ;;  %s724_s23 = sadd.s32 4294967294, %s1183_s21   ;;  %s1183_s21 = sphi %s1231_s21, %s1511_s21   ;;  %s1179_s20 = sphi %s1229_s20, %s1510_s20   ;;  %s1175_s19 = sphi %s1227_s19, %s1509_s19   ;;  %s1171_s18 = sphi %s1225_s18, %s1508_s18  }
   0x7   : > { %p125_p0 = scmp.ne.s32.totalorder %s1175_s19, %s1171_s18  ;;  %p1485_p1 = scmp.eq.s32.totalorder %s1246_s22, 0 }
   0x8   : > { %p149_p2 = scmp.eq.s32.totalorder %s1246_s22, 1  ;;  %p155_p3 = scmp.eq.s32.totalorder %s724_s23, 1 }
   0x9   : > { %p1255_p4 = por %p1485_p1, %p125_p0  ;;  %p725_p5 = scmp.ge.s32.totalorder %s1183_s21, 1 }
   0xa   : > { %p1260_p6 = por %p155_p3, %p125_p0  ;;  %p162_p7 = scmp.lt.s32.totalorder %s1183_s21, 3 }
   0xb   : > { %s1490_s24 = scalar_select %p1255_p4, 1, 0 }
   0xc   : > { %s1491_s25 = scalar_select %p1260_p6, 1, 0 }
   0xd   : > { %p1265_p8 = pnand %p725_p5, %p162_p7  ;;  %s1185_s27 = smov [#allocation2]  }
   0xe   : > { %s174_s28 = sshll.u32 %s1185_s27, 4  ;;  %s1186_s30 = smov [#allocation5]   ;;  %s175_s28 = int_to_ptr.vmem [resolvable:$true] %s174_s28 }
   0xf   : > { %s1492_s26 = scalar_select %p1265_p8, 1, 0 }
  0x10   : > { %p904_p9 = pneg %p1265_p8  ;;  %s187_s6 = sshll.u32 %s1186_s30, 4  ;;  %s188_s6 = int_to_ptr.vmem [resolvable:$true] %s187_s6 }
  0x11   : > { %s1187_s7 = smov [#allocation7]   ;;  %s986_s9 = scalar_lea.vmem %s175_s28, 2048 }
  0x12   : > { %p1274_p11 = pnand %p904_p9, %p1485_p1  ;;  %s200_s8 = sshll.u32 %s1187_s7, 4  ;;  %s201_s8 = int_to_ptr.vmem [resolvable:$true] %s200_s8 }
  0x13   : > { %p987_p13 = scmp.ne.s32.totalorder %s175_s28, %s986_s9  ;;  %p994_p5 = scmp.lt.s32.totalorder %s175_s28, %s175_s28 }
  0x14   : > { %p977_p12 = pneg %p1274_p11  ;;  %p995_p7 = scmp.lt.s32.totalorder %s986_s9, %s986_s9 }
  0x16   : > { %p989_p0 = pnand %p987_p13, %p977_p12  ;;  %p996_p9 = por %p995_p7, %p994_p5 }
  0x18   : > { %p990_p3 = pneg %p989_p0 }
  0x1a   : > { %p997_p10 = pnand %p996_p9, %p990_p3 }
  0x1c   : > { %1000 = shalt.err (!%p997_p10)
}
  0x1d   : > { %s1486_s10 = smov 128   ;;  %s1189_s11 = smov 8  }
  0x1e   : > { %907 = dma.hbm_to_vmem [thread:$0]  (!%p1274_p11), %s1479_s0, 2048, %s175_s28, [#allocation3], %s1486_s10, %s1486_s10, %s1189_s11  }
  0x1f   : > { %s1012_s14 = scalar_lea.vmem %s188_s6, 2048  ;;  %p1020_p3 = scmp.lt.s32.totalorder %s188_s6, %s188_s6 }
  0x20   : > { %p1013_p13 = scmp.ne.s32.totalorder %s188_s6, %s1012_s14  ;;  %p1021_p10 = scmp.lt.s32.totalorder %s1012_s14, %s1012_s14 }
  0x22   : > { %p1015_p0 = pnand %p1013_p13, %p977_p12  ;;  %p1022_p7 = por %p1021_p10, %p1020_p3 }
  0x24   : > { %p1016_p5 = pneg %p1015_p0 }
  0x26   : > { %p1023_p9 = pnand %p1022_p7, %p1016_p5 }
  0x28   : > { %1026 = shalt.err (!%p1023_p9)
}
  0x29   : > { %910 = dma.hbm_to_vmem [thread:$0]  (!%p1274_p11), %s1480_s1, 2048, %s188_s6, [#allocation6], %s1486_s10, %s1486_s10, %s1189_s11  }
  0x2a   : > { %s1038_s17 = scalar_lea.vmem %s201_s8, 1024  ;;  %p1046_p3 = scmp.lt.s32.totalorder %s201_s8, %s201_s8 }
  0x2b   : > { %p1039_p1 = scmp.ne.s32.totalorder %s201_s8, %s1038_s17  ;;  %p1047_p5 = scmp.lt.s32.totalorder %s1038_s17, %s1038_s17 }
  0x2d   : > { %p1041_p13 = pnand %p1039_p1, %p977_p12  ;;  %p1048_p10 = por %p1047_p5, %p1046_p3 }
  0x2f   : > { %p1042_p0 = pneg %p1041_p13 }
  0x31   : > { %p1049_p7 = pnand %p1048_p10, %p1042_p0 }
  0x33   : > { %1052 = shalt.err (!%p1049_p7)
}
  0x34   : > { %913 = dma.hbm_to_vmem [thread:$0]  (!%p1274_p11), %s1481_s2, 1024, %s201_s8, [#allocation6], %s1486_s10, %s1486_s10, %s1189_s11  }
  0x35   : > { %s1190_s28 = smov [#allocation8]  }
  0x36   : > { %s213_s30 = sshll.u32 %s1190_s28, 4  ;;  %s214_s30 = int_to_ptr.vmem [resolvable:$true] %s213_s30 }
  0x37   : > { %s1064_s6 = scalar_lea.vmem %s214_s30, 1024  ;;  %p1072_p0 = scmp.lt.s32.totalorder %s214_s30, %s214_s30 }
  0x38   : > { %p1065_p1 = scmp.ne.s32.totalorder %s214_s30, %s1064_s6  ;;  %p1073_p3 = scmp.lt.s32.totalorder %s1064_s6, %s1064_s6 }
  0x3a   : > { %p1067_p9 = pnand %p1065_p1, %p977_p12  ;;  %p1074_p5 = por %p1073_p3, %p1072_p0 }
  0x3c   : > { %p1068_p13 = pneg %p1067_p9 }
  0x3e   : > { %p1075_p10 = pnand %p1074_p5, %p1068_p13 }
  0x40   : > { %1078 = shalt.err (!%p1075_p10)
}
  0x41   : > { %916 = dma.hbm_to_vmem [thread:$0]  (!%p1274_p11), %s1482_s3, 1024, %s214_s30, [#allocation9], %s1486_s10, %s1486_s10, %s1189_s11  }
  0x42   : > { %s1325_s29 = sadd.s32 1, %s1183_s21   ;;  %s112_s9 = sadd.s32 1, %s1179_s20 }
  0x43   : > { %s109_s12 = ssub.s32 %s1183_s21, %s1325_s29  ;;  %p119_p12 = scmp.ne.s32.totalorder %s1179_s20, %s1175_s19 }
  0x44   : > { %p110_p7 = scmp.eq.s32.totalorder %s109_s12, 0  ;;  %p120_p1 = scmp.eq.s32.totalorder %s1183_s21, 0 }
  0x45   : > { %p1335_p9 = por %p149_p2, %p119_p12  ;;  %p929_p13 = scmp.lt.s32.totalorder %s1183_s21, 2 }
  0x46   : > { %s1341_s14 = scalar_select %p110_p7, %s1179_s20, %s112_s9  }
  0x47   : > { %s1494_s13 = scalar_select %p1335_p9, 1, 0 }
  0x48   : > { %p121_p0 = por %p120_p1, %p119_p12  ;;  %s227_s15 = sand.u32 1, %s1183_s21  }
  0x49   : > { %s229_s16 = sand.u32 1, %s1179_s20   ;;  %s746_s23 = sshll.u32 %s1183_s21, 10 }
  0x4a   : > { %s731_s17 = sshll.u32 %s229_s16, 6  ;;  %s1349_s30 = scalar_lea.hbm %s1483_s4, %s746_s23 }
  0x4b   : > { %s231_s6 = scalar_lea.vmem [#allocation10], %s731_s17  ;;  %p1351_p2 = pnand %p929_p13, %p121_p0 }
  0x4c   : > { %s238_s7 = sshll.u32 %s231_s6, 4  ;;  %s1357_s9 = scalar_lea.sflag [#allocation3], %s227_s15  ;;  %s1355_s7 = int_to_ptr.vmem [resolvable:$true] %s238_s7 }
  0x4d   : > { %s1079_s12 = scalar_lea.hbm %s1349_s30, 1024  ;;  %p1081_p3 = pneg %p1351_p2 }
  0x4e   : > { %p1080_p11 = scmp.ne.s32.totalorder %s1349_s30, %s1079_s12  ;;  %s1084_s17 = scalar_lea.hbm %s1483_s4, 2048 }
  0x4f   : > { %p1085_p12 = scmp.lt.s32.totalorder %s1349_s30, %s1483_s4  ;;  %p1086_p7 = scmp.lt.s32.totalorder %s1084_s17, %s1079_s12 }
  0x50   : > { %p1082_p5 = pnand %p1081_p3, %p1080_p11 }
  0x51   : > { %p1087_p1 = por %p1086_p7, %p1085_p12 }
  0x52   : > { %p1083_p10 = pneg %p1082_p5 }
  0x54   : > { %p1088_p13 = pnand %p1087_p1, %p1083_p10 }
  0x56   : > { %1091 = shalt.err (!%p1088_p13)
}
  0x57   : > { %s1092_s15 = scalar_lea.vmem %s1355_s7, 1024  ;;  %s1191_s6 = smov [#allocation10]  }
  0x58   : > { %p1093_p0 = scmp.ne.s32.totalorder %s1355_s7, %s1092_s15  ;;  %s1097_s10 = sshll.u32 %s1191_s6, 4  ;;  %s1098_s10 = int_to_ptr.vmem [resolvable:$false] %s1097_s10 }
  0x59   : > { %s1099_s16 = scalar_lea.vmem %s1098_s10, 2048  ;;  %p1100_p5 = scmp.lt.s32.totalorder %s1355_s7, %s1098_s10 }
  0x5a   : > { %p1095_p6 = pnand %p1093_p0, %p1081_p3  ;;  %p1101_p9 = scmp.lt.s32.totalorder %s1099_s16, %s1092_s15 }
  0x5c   : > { %p1096_p11 = pneg %p1095_p6  ;;  %p1102_p4 = por %p1101_p9, %p1100_p5 }
  0x5e   : > { %p1103_p8 = pnand %p1102_p4, %p1096_p11 }
  0x60   : > { %1106 = shalt.err (!%p1103_p8)
}
  0x61   : > { %s1496_s12 = smov 128   ;;  %p1497_p6 = scmp.ne.s32.totalorder %s1492_s26, 0 }
  0x62   : > { %920 = dma.hbm_to_vmem [thread:$0]  (!%p1351_p2), %s1349_s30, 1024, %s1355_s7, %s1357_s9, %s1496_s12, %s1496_s12, %s1189_s11  }
  0x63   : > { %250 = sbr.rel (%p1497_p6) target bundleno = 376 (0x178), region = 40  ;;  %p1498_p3 = scmp.eq.s32.totalorder (!%p1497_p6), %s1246_s22, 0 }
  0x68   : > { %1150 = dma.done.wait (%p1498_p3), [#allocation3], 2048   ;;  %p1499_p10 = pmov %p1498_p3 }
  0x69   : > { %p1500_p4 = pmov %p1498_p3 }
  0x6a   : > { %1152 = vsyncadd (%p1499_p10), [#allocation3], 4294965248 }
  0x6b   : > { %1154 = dma.done.wait (%p1500_p4), [#allocation6], 3072   ;;  %p1501_p8 = pmov %p1498_p3 }
  0x6c   : > { %p1502_p9 = pmov %p1498_p3 }
  0x6d   : > { %1156 = vsyncadd (%p1501_p8), [#allocation6], 4294964224 }
  0x6e   : > { %1158 = dma.done.wait (%p1502_p9), [#allocation9], 1024   ;;  %p1503_p2 = pmov %p1498_p3 }
  0x6f   : > { %s268_s26 = sand.u32 1, %s1246_s22   ;;  %s270_s10 = sand.u32 1, %s1175_s19  }
  0x70   : > { %1160 = vsyncadd (%p1503_p2), [#allocation9], 4294966272  ;;  %s1399_s11 = sshll.u32 %s270_s10, 6  ;;  %s269_s30 = scalar_lea.sflag [#allocation3], %s268_s26 }
  0x71   : > { %s1402_s7 = scalar_lea.vmem [#allocation10], %s1399_s11  ;;  %p1504_p12 = scmp.ne.s32.totalorder %s1490_s24, 0 }
  0x73   : > { %1162 = dma.done.wait (%p1504_p12), %s269_s30, 1024  }
  0x74   : > { %1164 = vsyncadd (%p1504_p12), %s269_s30, 4294966272  ;;  %v324_v0 = vld [vmem:[#allocation2 + $0x78] sm:$0xff]  ;;  %v323_v2 = vld [vmem:[#allocation2 + $0x70] sm:$0xff]  ;;  %s1417_s24 = scalar_lea.vmem [#allocation11], %s1399_s11  ;;  %s747_s9 = sshll.u32 %s1246_s22, 10 }
  0x75   : > { %v445_v1 = vld [vmem:[#allocation5 + $0x78] sm:$0xff]  ;;  %796 = vmatprep.subr.mxu0 %v324_v0  ;;  %v444_v3 = vld [vmem:[#allocation5 + $0x70] sm:$0xff]  ;;  %v322_v4 = vld [vmem:[#allocation2 + $0x68] sm:$0xff]  ;;  %s613_s8 = sshll.u32 %s1417_s24, 4  ;;  %s1432_s27 = scalar_lea.hbm %s1484_s5, %s747_s9  ;;  %s1426_s8 = int_to_ptr.vmem [resolvable:$true] %s613_s8 }
  0x76   : > { %840 = vmatprep.subr.mxu1 %v445_v1  ;;  %797 = vmatpush3.msra.mxu0 %v324_v0  ;;  %v443_v5 = vld [vmem:[#allocation5 + $0x68] sm:$0xff]  ;;  %v321_v6 = vld [vmem:[#allocation2 + $0x60] sm:$0xff]  ;;  %v320_v8 = vld [vmem:[#allocation2 + $0x58] sm:$0xff]  ;;  %s1438_s22 = scalar_lea.sflag [#allocation4], %s270_s10  ;;  %s1107_s28 = scalar_lea.vmem %s1426_s8, 1024 }
  0x77   : > { %841 = vmatpush3.msra.mxu1 %v445_v1  ;;  %798 = vmatprep.subr.mxu0 %v323_v2  ;;  %v442_v7 = vld [vmem:[#allocation5 + $0x60] sm:$0xff]  ;;  %v441_v9 = vld [vmem:[#allocation5 + $0x58] sm:$0xff]  ;;  %v319_v10 = vld [vmem:[#allocation2 + $0x50] sm:$0xff]  ;;  %p1108_p7 = scmp.ne.s32.totalorder %s1426_s8, %s1107_s28  ;;  %p1505_p1 = scmp.ne.s32.totalorder %s1494_s13, 0 }
  0x78   : > { %842 = vmatprep.subr.mxu1 %v444_v3  ;;  %799 = vmatpush3.msra.mxu0 %v323_v2  ;;  %v440_v11 = vld [vmem:[#allocation5 + $0x50] sm:$0xff]  ;;  %v318_v12 = vld [vmem:[#allocation2 + $0x48] sm:$0xff]  ;;  %v317_v14 = vld [vmem:[#allocation2 + $0x40] sm:$0xff]  ;;  %s1192_s15 = smov [#allocation11]  }
  0x79   : > { %843 = vmatpush3.msra.mxu1 %v444_v3  ;;  %800 = vmatprep.subr.mxu0 %v322_v4  ;;  %v439_v13 = vld [vmem:[#allocation5 + $0x48] sm:$0xff]  ;;  %v438_v15 = vld [vmem:[#allocation5 + $0x40] sm:$0xff]  ;;  %v316_v16 = vld [vmem:[#allocation2 + $0x38] sm:$0xff]  ;;  %p1109_p13 = pnand %p1108_p7, %p1505_p1  ;;  %s1111_s6 = sshll.u32 %s1192_s15, 4  ;;  %s1112_s6 = int_to_ptr.vmem [resolvable:$false] %s1111_s6 }
  0x7a   : > { %844 = vmatprep.subr.mxu1 %v443_v5  ;;  %801 = vmatpush3.msra.mxu0 %v322_v4  ;;  %v437_v17 = vld [vmem:[#allocation5 + $0x38] sm:$0xff]  ;;  %v315_v18 = vld [vmem:[#allocation2 + $0x30] sm:$0xff]  ;;  %v314_v20 = vld [vmem:[#allocation2 + $0x28] sm:$0xff]  ;;  %s1113_s16 = scalar_lea.vmem %s1112_s6, 2048  ;;  %p1114_p11 = scmp.lt.s32.totalorder %s1426_s8, %s1112_s6 }
  0x7b   : > { %845 = vmatpush3.msra.mxu1 %v443_v5  ;;  %802 = vmatprep.subr.mxu0 %v321_v6  ;;  %v436_v19 = vld [vmem:[#allocation5 + $0x30] sm:$0xff]  ;;  %v435_v21 = vld [vmem:[#allocation5 + $0x28] sm:$0xff]  ;;  %v313_v22 = vld [vmem:[#allocation2 + $0x20] sm:$0xff]  ;;  %p1110_p0 = pneg %p1109_p13  ;;  %p1115_p5 = scmp.lt.s32.totalorder %s1113_s16, %s1107_s28 }
  0x7c   : > { %846 = vmatprep.subr.mxu1 %v442_v7  ;;  %803 = vmatpush3.msra.mxu0 %v321_v6  ;;  %v434_v23 = vld [vmem:[#allocation5 + $0x20] sm:$0xff]  ;;  %v312_v24 = vld [vmem:[#allocation2 + $0x18] sm:$0xff]  ;;  %v311_v26 = vld [vmem:[#allocation2 + $0x10] sm:$0xff] }
  0x7d   : > { %847 = vmatpush3.msra.mxu1 %v442_v7  ;;  %804 = vmatprep.subr.mxu0 %v320_v8  ;;  %v433_v25 = vld [vmem:[#allocation5 + $0x18] sm:$0xff]  ;;  %v432_v27 = vld [vmem:[#allocation5 + $0x10] sm:$0xff]  ;;  %v310_v28 = vld [vmem:[#allocation2 + $0x8] sm:$0xff]  ;;  %p1116_p6 = por %p1115_p5, %p1114_p11 }
  0x7e   : > { %848 = vmatprep.subr.mxu1 %v441_v9  ;;  %805 = vmatpush3.msra.mxu0 %v320_v8  ;;  %v431_v29 = vld [vmem:[#allocation5 + $0x8] sm:$0xff]  ;;  %v309_v30 = vld [vmem:[#allocation2] sm:$0xff]  ;;  %v303_v34 = vld [vmem:[%s1402_s7 + $0x10] sm:$0xff] }
  0x7f   : > { %849 = vmatpush3.msra.mxu1 %v441_v9  ;;  %806 = vmatprep.subr.mxu0 %v319_v10  ;;  %v430_v31 = vld [vmem:[#allocation5] sm:$0xff]  ;;  %v302_v33 = vld [vmem:[%s1402_s7 + $0x8] sm:$0xff]  ;;  %v304_v35 = vld [vmem:[%s1402_s7 + $0x18] sm:$0xff]  ;;  %p1117_p3 = pnand %p1116_p6, %p1110_p0 }
  0x80   : > { %850 = vmatprep.subr.mxu1 %v440_v11  ;;  %807 = vmatpush3.msra.mxu0 %v319_v10  ;;  %v301_v32 = vld [vmem:[%s1402_s7] sm:$0xff]  ;;  %v306_v37 = vld [vmem:[%s1402_s7 + $0x28] sm:$0xff]  ;;  %v307_v38 = vld [vmem:[%s1402_s7 + $0x30] sm:$0xff] }
  0x81   : > { %851 = vmatpush3.msra.mxu1 %v440_v11  ;;  %808 = vmatprep.subr.mxu0 %v318_v12  ;;  %v305_v36 = vld [vmem:[%s1402_s7 + $0x20] sm:$0xff]  ;;  %v308_v39 = vld [vmem:[%s1402_s7 + $0x38] sm:$0xff]  ;;  %v552_v40 = vld [vmem:[#allocation7 + $0x8] sm:$0xff] }
  0x82   : > { %852 = vmatprep.subr.mxu1 %v439_v13  ;;  %809 = vmatpush3.msra.mxu0 %v318_v12  ;;  %v568_v41 = vld [vmem:[#allocation8 + $0x8] sm:$0xff]  ;;  %v551_v44 = vld [vmem:[#allocation7] sm:$0xff]  ;;  %v554_v50 = vld [vmem:[#allocation7 + $0x18] sm:$0xff] }
  0x83   : > { %853 = vmatpush3.msra.mxu1 %v439_v13  ;;  %810 = vmatprep.subr.mxu0 %v317_v14  ;;  %v567_v45 = vld [vmem:[#allocation8] sm:$0xff]  ;;  %v570_v51 = vld [vmem:[#allocation8 + $0x18] sm:$0xff]  ;;  %v553_v57 = vld [vmem:[#allocation7 + $0x10] sm:$0xff] }
  0x84   : > { %854 = vmatprep.subr.mxu1 %v438_v15  ;;  %811 = vmatpush3.msra.mxu0 %v317_v14  ;;  %v569_v58 = vld [vmem:[#allocation8 + $0x10] sm:$0xff]  ;;  %v556_v0 = vld [vmem:[#allocation7 + $0x28] sm:$0xff]  ;;  %v555_v7 = vld [vmem:[#allocation7 + $0x20] sm:$0xff] }
  0x85   : > { %855 = vmatpush3.msra.mxu1 %v438_v15  ;;  %812 = vmatprep.subr.mxu0 %v316_v16  ;;  %v572_v1 = vld [vmem:[#allocation8 + $0x28] sm:$0xff]  ;;  %v571_v8 = vld [vmem:[#allocation8 + $0x20] sm:$0xff]  ;;  %v558_v14 = vld [vmem:[#allocation7 + $0x38] sm:$0xff] }
  0x86   : > { %856 = vmatprep.subr.mxu1 %v437_v17  ;;  %813 = vmatpush3.msra.mxu0 %v316_v16  ;;  %v574_v15 = vld [vmem:[#allocation8 + $0x38] sm:$0xff] }
  0x87   : > { %857 = vmatpush3.msra.mxu1 %v437_v17  ;;  %814 = vmatprep.subr.mxu0 %v315_v18 }
  0x88   : > { %858 = vmatprep.subr.mxu1 %v436_v19  ;;  %815 = vmatpush3.msra.mxu0 %v315_v18 }
  0x89   : > { %859 = vmatpush3.msra.mxu1 %v436_v19  ;;  %816 = vmatprep.subr.mxu0 %v314_v20 }
  0x8a   : > { %860 = vmatprep.subr.mxu1 %v435_v21  ;;  %817 = vmatpush3.msra.mxu0 %v314_v20 }
  0x8b   : > { %861 = vmatpush3.msra.mxu1 %v435_v21  ;;  %818 = vmatprep.subr.mxu0 %v313_v22  ;;  %v557_v21 = vld [vmem:[#allocation7 + $0x30] sm:$0xff] }
  0x8c   : > { %862 = vmatprep.subr.mxu1 %v434_v23  ;;  %819 = vmatpush3.msra.mxu0 %v313_v22  ;;  %v573_v22 = vld [vmem:[#allocation8 + $0x30] sm:$0xff] }
  0x8d   : > { %863 = vmatpush3.msra.mxu1 %v434_v23  ;;  %820 = vmatprep.subr.mxu0 %v312_v24 }
  0x8e   : > { %864 = vmatprep.subr.mxu1 %v433_v25  ;;  %821 = vmatpush3.msra.mxu0 %v312_v24 }
  0x8f   : > { %865 = vmatpush3.msra.mxu1 %v433_v25  ;;  %822 = vmatprep.subr.mxu0 %v311_v26 }
  0x90   : > { %866 = vmatprep.subr.mxu1 %v432_v27  ;;  %823 = vmatpush3.msra.mxu0 %v311_v26 }
  0x91   : > { %867 = vmatpush3.msra.mxu1 %v432_v27  ;;  %824 = vmatprep.subr.mxu0 %v310_v28 }
  0x92   : > { %868 = vmatprep.subr.mxu1 %v431_v29  ;;  %825 = vmatpush3.msra.mxu0 %v310_v28 }
  0x93   : > { %869 = vmatpush3.msra.mxu1 %v431_v29  ;;  %826 = vmatprep.subr.mxu0 %v309_v30 }
  0x94   : > { %870 = vmatprep.subr.mxu1 %v430_v31  ;;  %827 = vmatpush3.msra.mxu0 %v309_v30 }
  0x95   : > { %828 = vmatprep.mubr.f32.mxu0 %v301_v32  ;;  %871 = vmatpush3.msra.mxu1 %v430_v31 }
  0x96   : > { %872 = vmatprep.mubr.f32.mxu1 %v301_v32  ;;  %829 = vmatmul.mubr.f32.vlgmr.msra.gmra.mxu0 %v302_v33 }
  0x97   : > { %873 = vmatmul.mubr.f32.vlgmr.msra.gmra.mxu1 %v302_v33  ;;  %831 = vmatprep.mubr.f32.mxu0 %v303_v34 }
  0x98   : > { %875 = vmatprep.mubr.f32.mxu1 %v303_v34 }
  0x9a   : > { %832 = vmatmul.mubr.f32.gmra.mxu0 %v304_v35 }
  0x9b   : > { %876 = vmatmul.mubr.f32.gmra.mxu1 %v304_v35  ;;  %834 = vmatprep.mubr.f32.mxu0 %v305_v36 }
  0x9c   : > { %878 = vmatprep.mubr.f32.mxu1 %v305_v36 }
  0x9e   : > { %835 = vmatmul.mubr.f32.gmra.mxu0 %v306_v37 }
  0x9f   : > { %879 = vmatmul.mubr.f32.gmra.mxu1 %v306_v37  ;;  %837 = vmatprep.mubr.f32.mxu0 %v307_v38 }
  0xa0   : > { %881 = vmatprep.mubr.f32.mxu1 %v307_v38 }
  0xa2   : > { %838 = vmatmul.mubr.f32.gmra.mxu0 %v308_v39 }
  0xa3   : > { %882 = vmatmul.mubr.f32.gmra.mxu1 %v308_v39 }
 0x156   : > { %v830_v42 = vpop.f32.mrf.mxu0 }
 0x157   : > { %v874_v43 = vpop.f32.mrf.mxu1  ;;  %v560_v46 = vmul.f32 %v830_v42, %v552_v40 }
 0x158   : > { %v576_v47 = vmul.f32 %v874_v43, %v568_v41  ;;  %v391_v48 = vpop.f32.mrf.mxu0 }
 0x159   : > { %v512_v49 = vpop.f32.mrf.mxu1  ;;  %v559_v53 = vmul.f32 %v551_v44, %v391_v48 }
 0x15a   : > { %v584_v52 = vadd.f32 %v576_v47, %v560_v46  ;;  %v575_v54 = vmul.f32 %v567_v45, %v512_v49  ;;  %v833_v55 = vpop.f32.mrf.mxu0 }
 0x15b   : > { %v877_v56 = vpop.f32.mrf.mxu1  ;;  %v562_v60 = vmul.f32 %v833_v55, %v554_v50 }
 0x15c   : > { %592 = vst [vmem:[%s1417_s24 + $0x8] sm:$0xff] %v584_v52  ;;  %v583_v59 = vadd.f32 %v575_v54, %v559_v53  ;;  %v578_v61 = vmul.f32 %v877_v56, %v570_v51  ;;  %v401_v62 = vpop.f32.mrf.mxu0 }
 0x15d   : > { %v522_v63 = vpop.f32.mrf.mxu1  ;;  %v561_v3 = vmul.f32 %v553_v57, %v401_v62 }
 0x15e   : > { %591 = vst [vmem:[%s1417_s24] sm:$0xff] %v583_v59  ;;  %v586_v2 = vadd.f32 %v578_v61, %v562_v60  ;;  %v577_v4 = vmul.f32 %v569_v58, %v522_v63  ;;  %v836_v5 = vpop.f32.mrf.mxu0 }
 0x15f   : > { %v880_v6 = vpop.f32.mrf.mxu1  ;;  %v564_v10 = vmul.f32 %v836_v5, %v556_v0 }
 0x160   : > { %594 = vst [vmem:[%s1417_s24 + $0x18] sm:$0xff] %v586_v2  ;;  %v585_v9 = vadd.f32 %v577_v4, %v561_v3  ;;  %v580_v11 = vmul.f32 %v880_v6, %v572_v1  ;;  %v411_v12 = vpop.f32.mrf.mxu0 }
 0x161   : > { %v532_v13 = vpop.f32.mrf.mxu1  ;;  %v563_v17 = vmul.f32 %v555_v7, %v411_v12 }
 0x162   : > { %593 = vst [vmem:[%s1417_s24 + $0x10] sm:$0xff] %v585_v9  ;;  %v588_v16 = vadd.f32 %v580_v11, %v564_v10  ;;  %v579_v18 = vmul.f32 %v571_v8, %v532_v13  ;;  %v839_v19 = vpop.f32.mrf.mxu0 }
 0x163   : > { %v883_v20 = vpop.f32.mrf.mxu1  ;;  %v566_v24 = vmul.f32 %v839_v19, %v558_v14 }
 0x164   : > { %596 = vst [vmem:[%s1417_s24 + $0x28] sm:$0xff] %v588_v16  ;;  %v587_v23 = vadd.f32 %v579_v18, %v563_v17  ;;  %v582_v25 = vmul.f32 %v883_v20, %v574_v15  ;;  %v421_v26 = vpop.f32.mrf.mxu0 }
 0x165   : > { %v542_v27 = vpop.f32.mrf.mxu1  ;;  %v565_v29 = vmul.f32 %v557_v21, %v421_v26 }
 0x166   : > { %595 = vst [vmem:[%s1417_s24 + $0x20] sm:$0xff] %v587_v23  ;;  %v590_v28 = vadd.f32 %v582_v25, %v566_v24  ;;  %v581_v30 = vmul.f32 %v573_v22, %v542_v27 }
 0x168   : > { %598 = vst [vmem:[%s1417_s24 + $0x38] sm:$0xff] %v590_v28  ;;  %v589_v31 = vadd.f32 %v581_v30, %v565_v29 }
 0x16a   : > { %597 = vst [vmem:[%s1417_s24 + $0x30] sm:$0xff] %v589_v31 }
 0x16b   : > { %1120 = shalt.err (!%p1117_p3)
}
 0x16c   : > { %s1121_s12 = scalar_lea.hbm %s1432_s27, 1024  ;;  %s1125_s11 = scalar_lea.hbm %s1484_s5, 2048 }
 0x16d   : > { %p1122_p10 = scmp.ne.s32.totalorder %s1432_s27, %s1121_s12  ;;  %p1126_p9 = scmp.lt.s32.totalorder %s1432_s27, %s1484_s5 }
 0x16e   : > { %p1127_p2 = scmp.lt.s32.totalorder %s1125_s11, %s1121_s12 }
 0x16f   : > { %p1123_p4 = pnand %p1122_p10, %p1505_p1 }
 0x170   : > { %p1128_p12 = por %p1127_p2, %p1126_p9 }
 0x171   : > { %p1124_p8 = pneg %p1123_p4 }
 0x173   : > { %p1129_p7 = pnand %p1128_p12, %p1124_p8 }
 0x175   : > { %1132 = shalt.err (!%p1129_p7)
}
 0x176   : > { %s1193_s24 = smov 128   ;;  %s1194_s9 = smov 8  }
 0x177   : > { %902 = dma.vmem_to_hbm [thread:$0]  (%p1505_p1), %s1426_s8, 1024, %s1432_s27, %s1438_s22, %s1193_s24, %s1193_s24, %s1194_s9  }
 0x178 PF: > { %s628_s23 = sand.u32 1, %s1171_s18   ;;  %p1506_p13 = scmp.ne.s32.totalorder %s1491_s25, 0 }
 0x179   : > { %p1507_p0 = scmp.ge.s32.totalorder %s1183_s21, 2  ;;  %s629_s17 = scalar_lea.sflag [#allocation4], %s628_s23 }
 0x17b   : > { %p922_p11 = pnand %p1507_p0, %p1506_p13 }
 0x17d   : > { %p923_p5 = pneg %p922_p11 }
 0x17f   : > { %1166 = dma.done.wait (%p923_p5), %s629_s17, 1024  }
 0x180   : > { %1168 = vsyncadd (%p923_p5), %s629_s17, 4294966272  ;;  %p18_p6 = scmp.ge.s32.totalorder %s1325_s29, 4   ;;  %s1508_s18 = smov %s1175_s19 }
 0x181   : > { %s1509_s19 = smov %s1179_s20  ;;  %s1510_s20 = smov %s1341_s14 }
 0x182   : > { %s1511_s21 = smov %s1325_s29  ;;  %20 = sbr.rel (!%p18_p6) target bundleno = 6 (0x6), region = 100 }
 0x187   :  { %634 = vsyncpa [#allocation3], 1 }
 0x188   :  { %636 = vsyncpa [#allocation3 + $0x1], 1 }
 0x189   :  { %637 = vsyncpa [#allocation6], 1 }
 0x18a   :  { %638 = vsyncpa [#allocation9], 1 }
 0x18b   :  { %639 = vsyncpa [#allocation4], 1 }
 0x18c   :  { %641 = vsyncpa [#allocation4 + $0x1], 1 }

</bundles_post_ra>
